<compile_context>
chip_gen: v7x
topology: tpu7x:2x2x1
jax: 0.10.0
libtpu: 0.0.40
codegen_flags: <defaults>
</compile_context>

<pallas_src>
import jax
import jax.numpy as jnp
from jax.experimental import pallas as pl
from jax.experimental.pallas import tpu as pltpu

_LANE = 128
_ROW_ALIGN = 32                       # int8 output native sublane tiling
_INPUT_VMEM_BUDGET = 8 * 1024 * 1024  # double-buffered input tile budget (bytes)


def _round_up(x, m):
    return ((x + m - 1) // m) * m


def _make_fuse_kernel(num_channel):
    """fused = sum_c mask_c * scale[c]; out = (fused > 0.5) as int8."""

    def kernel(scale_ref, *refs):
        mask_refs = refs[:num_channel]
        out_ref = refs[num_channel]
        # Unrolled chain of C vreg FMAs (C is tiny); scale comes from SMEM scalars.
        acc = mask_refs[0][...].astype(jnp.float32) * scale_ref[0]
        for c in range(1, num_channel):
            acc = acc + mask_refs[c][...].astype(jnp.float32) * scale_ref[c]
        out_ref[...] = (acc > 0.5).astype(jnp.int8)

    return kernel


def graph_channel_att_layer(edge_mask_list, weight):
    """JAX/Pallas equivalent of GraphChannelAttLayer.forward.

    edge_mask_list: list of C float arrays of shape (E,)
    weight:         float array of shape (C,)
    returns:        bool array of shape (E,)
    """
    num_channel = len(edge_mask_list)
    num_edges = edge_mask_list[0].shape[0]

    # ---- hoisted per-channel scalars (C elements; trivial XLA cost) -----------
    sw = jax.nn.softmax(weight.astype(jnp.float32), axis=0)                  # (C,)
    l1 = jnp.stack([jnp.sum(jnp.abs(m.astype(jnp.float32)))
                    for m in edge_mask_list])                                # (C,)
    scale = sw / jnp.maximum(l1, 1e-12)                                      # (C,)

    # ---- lane-dense layout + tile sizing --------------------------------------
    rows = -(-num_edges // _LANE)
    cap_rows = max(
        _ROW_ALIGN,
        (_INPUT_VMEM_BUDGET // (2 * num_channel * _LANE * 4)) // _ROW_ALIGN * _ROW_ALIGN,
    )
    tile_rows = min(cap_rows, _round_up(rows, _ROW_ALIGN))
    rows_pad = _round_up(rows, tile_rows)
    edges_pad = rows_pad * _LANE

    # Pad is a no-op copy when E is already tile-aligned; reshape is layout-only.
    masks2d = [
        jnp.pad(m.astype(jnp.float32), (0, edges_pad - num_edges)).reshape(rows_pad, _LANE)
        for m in edge_mask_list
    ]

    grid = (rows_pad // tile_rows,)
    mask_spec = pl.BlockSpec((tile_rows, _LANE), lambda i: (i, 0))

    out_i8 = pl.pallas_call(
        _make_fuse_kernel(num_channel),
        out_shape=jax.ShapeDtypeStruct((rows_pad, _LANE), jnp.int8),
        grid=grid,
        in_specs=[pl.BlockSpec(memory_space=pltpu.MemorySpace.SMEM)]   # scale (C,) in SMEM
        + [mask_spec] * num_channel,
        out_specs=pl.BlockSpec((tile_rows, _LANE), lambda i: (i, 0)),
        compiler_params=pltpu.CompilerParams(
            dimension_semantics=("parallel",),
            vmem_limit_bytes=32 * 1024 * 1024,
        ),
        cost_estimate=pl.CostEstimate(
            flops=2 * num_channel * edges_pad,
            transcendentals=0,
            bytes_accessed=num_channel * edges_pad * 4 + edges_pad,
        ),
    )(scale, *masks2d)

    # glue: drop padding, convert 0/1 int8 -> bool
    return out_i8.reshape(edges_pad)[:num_edges] != 0


def _reference(edge_mask_list, weight):
    m = jnp.stack([x.astype(jnp.float32) for x in edge_mask_list], axis=0)
    l1 = jnp.maximum(jnp.sum(jnp.abs(m), axis=1, keepdims=True), 1e-12)
    m = m / l1
    sw = jax.nn.softmax(weight.astype(jnp.float32), axis=0)
    fused = jnp.sum(m * sw[:, None], axis=0)
    return fused > 0.5


if __name__ == "__main__":
    num_channel = 4      # number of channel graphs / edge-mask lists
    num_edges = 300      # deliberately NOT a multiple of 128 -> exercises padded tail

    key = jax.random.PRNGKey(0)
    keys = jax.random.split(key, num_channel)
    edge_mask_list = []
    for k in keys:
        m = jax.random.uniform(k, (num_edges,), dtype=jnp.float32)
        # one edge dominating every channel's L1 mass so the >0.5 path produces a True
        m = m.at[42].set(5000.0)
        edge_mask_list.append(m)
    # nn.init.constant_(self.weight, 0.1) -> deterministic parameter init
    weight = jnp.full((num_channel,), 0.1, dtype=jnp.float32)

    out = graph_channel_att_layer(edge_mask_list, weight)
    out = jax.block_until_ready(out)

    ref = _reference(edge_mask_list, weight)
    assert out.shape == (num_edges,) and out.dtype == jnp.bool_
    assert bool(out[42])                     # non-trivial True edge
    assert bool(jnp.all(out == ref))
    print("KERNEL_OK")
</pallas_src>

<mosaic_0001>
module attributes {stable_mosaic.version = 11 : i64} {
  func.func @kernel(%arg0: i32, %arg1: memref<4xf32, #tpu.memory_space<smem>>, %arg2: memref<32x128xf32, #tpu.memory_space<vmem>>, %arg3: memref<32x128xf32, #tpu.memory_space<vmem>>, %arg4: memref<32x128xf32, #tpu.memory_space<vmem>>, %arg5: memref<32x128xf32, #tpu.memory_space<vmem>>, %arg6: memref<32x128xi8, #tpu.memory_space<vmem>>) attributes {dimension_semantics = [#tpu.dimension_semantics<parallel>], iteration_bounds = array<i64: 1>, scalar_prefetch = 0 : i64, scratch_operands = 0 : i64, tpu.core_type = #tpu.core_type<tc>, window_params = [{transform_indices = @transform_0, window_bounds = array<i64: 4>}, {transform_indices = @transform_1, window_bounds = array<i64: 32, 128>}, {transform_indices = @transform_2, window_bounds = array<i64: 32, 128>}, {transform_indices = @transform_3, window_bounds = array<i64: 32, 128>}, {transform_indices = @transform_4, window_bounds = array<i64: 32, 128>}, {transform_indices = @transform_5, window_bounds = array<i64: 32, 128>}]} {
    %c0 = arith.constant 0 : index
    %c0_0 = arith.constant 0 : index
    %0 = vector.load %arg2[%c0, %c0_0] : memref<32x128xf32, #tpu.memory_space<vmem>>, vector<32x128xf32>
    %c0_1 = arith.constant 0 : index
    %1 = memref.load %arg1[%c0_1] : memref<4xf32, #tpu.memory_space<smem>>
    %2 = vector.broadcast %1 : f32 to vector<32x128xf32>
    %3 = arith.mulf %0, %2 : vector<32x128xf32>
    %c0_2 = arith.constant 0 : index
    %c0_3 = arith.constant 0 : index
    %4 = vector.load %arg3[%c0_2, %c0_3] : memref<32x128xf32, #tpu.memory_space<vmem>>, vector<32x128xf32>
    %c1 = arith.constant 1 : index
    %5 = memref.load %arg1[%c1] : memref<4xf32, #tpu.memory_space<smem>>
    %6 = vector.broadcast %5 : f32 to vector<32x128xf32>
    %7 = arith.mulf %4, %6 : vector<32x128xf32>
    %8 = arith.addf %3, %7 : vector<32x128xf32>
    %c0_4 = arith.constant 0 : index
    %c0_5 = arith.constant 0 : index
    %9 = vector.load %arg4[%c0_4, %c0_5] : memref<32x128xf32, #tpu.memory_space<vmem>>, vector<32x128xf32>
    %c2 = arith.constant 2 : index
    %10 = memref.load %arg1[%c2] : memref<4xf32, #tpu.memory_space<smem>>
    %11 = vector.broadcast %10 : f32 to vector<32x128xf32>
    %12 = arith.mulf %9, %11 : vector<32x128xf32>
    %13 = arith.addf %8, %12 : vector<32x128xf32>
    %c0_6 = arith.constant 0 : index
    %c0_7 = arith.constant 0 : index
    %14 = vector.load %arg5[%c0_6, %c0_7] : memref<32x128xf32, #tpu.memory_space<vmem>>, vector<32x128xf32>
    %c3 = arith.constant 3 : index
    %15 = memref.load %arg1[%c3] : memref<4xf32, #tpu.memory_space<smem>>
    %16 = vector.broadcast %15 : f32 to vector<32x128xf32>
    %17 = arith.mulf %14, %16 : vector<32x128xf32>
    %18 = arith.addf %13, %17 : vector<32x128xf32>
    %cst = arith.constant 5.000000e-01 : f32
    %19 = vector.broadcast %cst : f32 to vector<32x128xf32>
    %20 = arith.cmpf ogt, %18, %19 : vector<32x128xf32>
    %21 = arith.extui %20 : vector<32x128xi1> to vector<32x128xi8>
    %c0_8 = arith.constant 0 : index
    %c0_9 = arith.constant 0 : index
    %22 = vector.load %arg6[%c0_8, %c0_9] : memref<32x128xi8, #tpu.memory_space<vmem>>, vector<32x128xi8>
    tpu.vector_store %arg6[%c0_8, %c0_9], %21 {strides = array<i32>} : memref<32x128xi8, #tpu.memory_space<vmem>>, vector<32x128xi8>,
    return
  }
  func.func @transform_0(%arg0: i32) -> i32 {
    %c0_i32 = arith.constant 0 : i32
    %c0_i32_0 = arith.constant 0 : i32
    return %c0_i32 : i32
  }
  func.func @transform_1(%arg0: i32) -> (i32, i32) {
    %c0_i32 = arith.constant 0 : i32
    %c0_i32_0 = arith.constant 0 : i32
    return %arg0, %c0_i32 : i32, i32
  }
  func.func @transform_2(%arg0: i32) -> (i32, i32) {
    %c0_i32 = arith.constant 0 : i32
    %c0_i32_0 = arith.constant 0 : i32
    return %arg0, %c0_i32 : i32, i32
  }
  func.func @transform_3(%arg0: i32) -> (i32, i32) {
    %c0_i32 = arith.constant 0 : i32
    %c0_i32_0 = arith.constant 0 : i32
    return %arg0, %c0_i32 : i32, i32
  }
  func.func @transform_4(%arg0: i32) -> (i32, i32) {
    %c0_i32 = arith.constant 0 : i32
    %c0_i32_0 = arith.constant 0 : i32
    return %arg0, %c0_i32 : i32, i32
  }
  func.func @transform_5(%arg0: i32) -> (i32, i32) {
    %c0_i32 = arith.constant 0 : i32
    %c0_i32_0 = arith.constant 0 : i32
    return %arg0, %c0_i32 : i32, i32
  }
}

</mosaic_0001>

<bundles_post_ra>
// kernel: tpu_custom_call.1
= control target key start
LH: loop header
LB: loop body
LE: loop exit
PB: predicated region body
PF: predicated region fallthrough
CT: control target
= control target key end

     0   :  { %10 = vsyncpa [#allocation5], 0  ;;  %s436_s0 = inlined_call_operand.hbm [shape: f32[4], index: 0, kind: input, shape index: {}]   ;;  %s437_s1 = inlined_call_operand.hbm [shape: f32[32,128], index: 1, kind: input, shape index: {}]   ;;  %s438_s2 = inlined_call_operand.hbm [shape: f32[32,128], index: 2, kind: input, shape index: {}]   ;;  %s439_s3 = inlined_call_operand.hbm [shape: f32[32,128], index: 3, kind: input, shape index: {}]   ;;  %s440_s4 = inlined_call_operand.hbm [shape: f32[32,128], index: 4, kind: input, shape index: {}]   ;;  %s441_s5 = inlined_call_operand.hbm [shape: s8[32,128], index: 5, kind: output, shape index: {}]  }
   0x1   :  { %11 = vsyncpa [#allocation3], 0 }
   0x2   :  { %12 = vsyncpa [#allocation8], 0 }
   0x3   :  { %13 = vsyncpa [#allocation11], 0 }
   0x4   :  { %14 = vsyncpa [#allocation4], 0  ;;  %s310_s18 = smov [#allocation7]   ;;  %s311_s20 = smov [#allocation6]  }
   0x5   :  { %s40_s19 = sshll.u32 %s310_s18, 4  ;;  %s28_s21 = sshll.u32 %s311_s20, 4  ;;  %s41_s19 = int_to_ptr.vmem [resolvable:$true] %s40_s19  ;;  %s29_s21 = int_to_ptr.vmem [resolvable:$true] %s28_s21 }
   0x6   :  { %s180_s24 = scalar_lea.hbm %s438_s2, 512 }
   0x7   :  { %p181_p0 = scmp.ne.s32.totalorder %s438_s2, %s180_s24  ;;  %p184_p1 = scmp.lt.u32.totalorder %s180_s24, %s438_s2 }
   0x9   :  { %p186_p2 = pnand %p184_p1, %p181_p0 }
   0xb   :  { %189 = shalt.err (!%p186_p2)
}
   0xc   :  { %s190_s29 = scalar_lea.vmem %s41_s19, 512  ;;  %p195_p4 = scmp.lt.s32.totalorder %s41_s19, %s41_s19 }
   0xd   :  { %p191_p3 = scmp.ne.s32.totalorder %s41_s19, %s190_s29  ;;  %p196_p5 = scmp.lt.s32.totalorder %s190_s29, %s190_s29 }
   0xf   :  { %p197_p6 = por %p196_p5, %p195_p4 }
  0x11   :  { %p198_p7 = pnand %p197_p6, %p191_p3 }
  0x13   :  { %201 = shalt.err (!%p198_p7)
}
  0x14   :  { %s312_s30 = smov 128   ;;  %s313_s6 = smov 8  }
  0x15   :  { %46 = dma.hbm_to_vmem [thread:$0]  %s438_s2, 512, %s41_s19, [#allocation8], %s312_s30, %s312_s30, %s313_s6  }
  0x16   :  { %s202_s11 = scalar_lea.hbm %s436_s0, 16 }
  0x17   :  { %p203_p8 = scmp.ne.s32.totalorder %s436_s0, %s202_s11  ;;  %p206_p9 = scmp.lt.u32.totalorder %s202_s11, %s436_s0 }
  0x19   :  { %p208_p10 = pnand %p206_p9, %p203_p8 }
  0x1b   :  { %211 = shalt.err (!%p208_p10)
}
  0x1c   :  { %s314_s16 = smov [#allocation2]   ;;  %s212_s20 = scalar_lea.hbm %s437_s1, 512 }
  0x1d   :  { %22 = dma.hbm_to_smem %s436_s0, 16, %s314_s16, [#allocation5]  }
  0x1e   :  { %p213_p11 = scmp.ne.s32.totalorder %s437_s1, %s212_s20  ;;  %p216_p12 = scmp.lt.u32.totalorder %s212_s20, %s437_s1 }
  0x20   :  { %p218_p13 = pnand %p216_p12, %p213_p11 }
  0x22   :  { %221 = shalt.err (!%p218_p13)
}
  0x23   :  { %s222_s26 = scalar_lea.vmem %s29_s21, 512  ;;  %p227_p1 = scmp.lt.s32.totalorder %s29_s21, %s29_s21 }
  0x24   :  { %p223_p0 = scmp.ne.s32.totalorder %s29_s21, %s222_s26  ;;  %p228_p2 = scmp.lt.s32.totalorder %s222_s26, %s222_s26 }
  0x26   :  { %p229_p3 = por %p228_p2, %p227_p1 }
  0x28   :  { %p230_p4 = pnand %p229_p3, %p223_p0 }
  0x2a   :  { %233 = shalt.err (!%p230_p4)
}
  0x2b   :  { %34 = dma.hbm_to_vmem [thread:$0]  %s437_s1, 512, %s29_s21, [#allocation3], %s312_s30, %s312_s30, %s313_s6  }
  0x2c   :  { %s315_s28 = smov [#allocation9]   ;;  %s316_s7 = smov [#allocation10]  }
  0x2d   :  { %s52_s29 = sshll.u32 %s315_s28, 4  ;;  %s64_s8 = sshll.u32 %s316_s7, 4  ;;  %s53_s29 = int_to_ptr.vmem [resolvable:$true] %s52_s29  ;;  %s65_s8 = int_to_ptr.vmem [resolvable:$true] %s64_s8 }
  0x2e   :  { %s234_s11 = scalar_lea.hbm %s439_s3, 512 }
  0x2f   :  { %p235_p5 = scmp.ne.s32.totalorder %s439_s3, %s234_s11  ;;  %p238_p6 = scmp.lt.u32.totalorder %s234_s11, %s439_s3 }
  0x31   :  { %p240_p7 = pnand %p238_p6, %p235_p5 }
  0x33   :  { %243 = shalt.err (!%p240_p7)
}
  0x34   :  { %s244_s1 = scalar_lea.vmem %s53_s29, 512  ;;  %p249_p9 = scmp.lt.s32.totalorder %s53_s29, %s53_s29 }
  0x35   :  { %p245_p8 = scmp.ne.s32.totalorder %s53_s29, %s244_s1  ;;  %p250_p10 = scmp.lt.s32.totalorder %s244_s1, %s244_s1 }
  0x37   :  { %p251_p11 = por %p250_p10, %p249_p9 }
  0x39   :  { %p252_p12 = pnand %p251_p11, %p245_p8 }
  0x3b   :  { %255 = shalt.err (!%p252_p12)
}
  0x3c   :  { %58 = dma.hbm_to_vmem [thread:$0]  %s439_s3, 512, %s53_s29, [#allocation8], %s312_s30, %s312_s30, %s313_s6  }
  0x3d   :  { %s256_s2 = scalar_lea.hbm %s440_s4, 512 }
  0x3e   :  { %p257_p13 = scmp.ne.s32.totalorder %s440_s4, %s256_s2  ;;  %p260_p0 = scmp.lt.u32.totalorder %s256_s2, %s440_s4 }
  0x40   :  { %p262_p1 = pnand %p260_p0, %p257_p13 }
  0x42   :  { %265 = shalt.err (!%p262_p1)
}
  0x43   :  { %s266_s24 = scalar_lea.vmem %s65_s8, 512  ;;  %p271_p3 = scmp.lt.s32.totalorder %s65_s8, %s65_s8 }
  0x44   :  { %p267_p2 = scmp.ne.s32.totalorder %s65_s8, %s266_s24  ;;  %p272_p4 = scmp.lt.s32.totalorder %s266_s24, %s266_s24 }
  0x46   :  { %p273_p5 = por %p272_p4, %p271_p3 }
  0x48   :  { %p274_p6 = pnand %p273_p5, %p267_p2 }
  0x4a   :  { %277 = shalt.err (!%p274_p6)
}
  0x4b   :  { %70 = dma.hbm_to_vmem [thread:$0]  %s440_s4, 512, %s65_s8, [#allocation11], %s312_s30, %s312_s30, %s313_s6  }
  0x4c   :  { %300 = dma.done.wait [#allocation5], 16  }
  0x4d   :  { %301 = vsyncadd [#allocation5], 4294967280 }
  0x4e   :  { %302 = dma.done.wait [#allocation3], 512  }
  0x4f   :  { %303 = vsyncadd [#allocation3], 4294966784 }
  0x50   :  { %304 = dma.done.wait [#allocation8], 1024  }
  0x51   :  { %305 = vsyncadd [#allocation8], 4294966272 }
  0x52   :  { %306 = dma.done.wait [#allocation11], 512  }
  0x53   :  { %307 = vsyncadd [#allocation11], 4294966784 }
  0x54   :  { %86 = sfence }
  0x55   :  { %s93_s26 = sld [smem:[#allocation2]]  ;;  %s168_s0 = sld [smem:[#allocation2 + $0x1]]  ;;  %v89_v0 = vld [vmem:[#allocation6] sm:$0xff]  ;;  %v90_v1 = vld [vmem:[#allocation6 + $0x8] sm:$0xff]  ;;  %v91_v2 = vld [vmem:[#allocation6 + $0x10] sm:$0xff]  ;;  %v318_v48 = vmov 0  }
  0x56   :  { %s169_s27 = sld [smem:[#allocation2 + $0x2]]  ;;  %v92_v3 = vld [vmem:[#allocation6 + $0x18] sm:$0xff]  ;;  %s421_s28 = sld [smem:[#allocation2 + $0x3]]  ;;  %v99_v4 = vld [vmem:[#allocation7] sm:$0xff]  ;;  %v100_v5 = vld [vmem:[#allocation7 + $0x8] sm:$0xff] }
  0x57   :  { %v101_v7 = vld [vmem:[#allocation7 + $0x10] sm:$0xff]  ;;  %v102_v8 = vld [vmem:[#allocation7 + $0x18] sm:$0xff]  ;;  %v113_v9 = vld [vmem:[#allocation9] sm:$0xff]  ;;  %s317_s4 = smov [#allocation12]  }
  0x58   :  { %v114_v14 = vld [vmem:[#allocation9 + $0x8] sm:$0xff]  ;;  %v115_v15 = vld [vmem:[#allocation9 + $0x10] sm:$0xff]  ;;  %v116_v16 = vld [vmem:[#allocation9 + $0x18] sm:$0xff]  ;;  %s156_s30 = sshll.u32 %s317_s4, 4  ;;  %s157_s30 = int_to_ptr.vmem [resolvable:$true] %s156_s30 }
  0x59   :  { %v127_v27 = vld [vmem:[#allocation10] sm:$0xff]  ;;  %v128_v32 = vld [vmem:[#allocation10 + $0x8] sm:$0xff]  ;;  %v129_v33 = vld [vmem:[#allocation10 + $0x10] sm:$0xff]  ;;  %s278_s6 = scalar_lea.vmem %s157_s30, 128  ;;  %p283_p8 = scmp.lt.s32.totalorder %s157_s30, %s157_s30 }
  0x5a   :  { %v130_v34 = vld [vmem:[#allocation10 + $0x18] sm:$0xff]  ;;  %p279_p7 = scmp.ne.s32.totalorder %s157_s30, %s278_s6  ;;  %p284_p9 = scmp.lt.s32.totalorder %s278_s6, %s278_s6 }
  0x5b   :  { %v94_v6 = vstv %s93_s26  ;;  %v104_v17 = vstv %s168_s0 }
  0x5c   :  { %v95_v10 = vmul.f32 %v94_v6, %v89_v0  ;;  %v96_v11 = vmul.f32 %v94_v6, %v90_v1  ;;  %v97_v12 = vmul.f32 %v94_v6, %v91_v2  ;;  %v98_v13 = vmul.f32 %v94_v6, %v92_v3  ;;  %p285_p10 = por %p284_p9, %p283_p8 }
  0x5d   :  { %v118_v18 = vstv %s169_s27  ;;  %v105_v19 = vmul.f32 %v104_v17, %v99_v4  ;;  %v106_v20 = vmul.f32 %v104_v17, %v100_v5  ;;  %v107_v21 = vmul.f32 %v104_v17, %v101_v7 }
  0x5e   :  { %v108_v22 = vmul.f32 %v104_v17, %v102_v8  ;;  %v119_v23 = vmul.f32 %v118_v18, %v113_v9  ;;  %v120_v24 = vmul.f32 %v118_v18, %v114_v14  ;;  %v121_v25 = vmul.f32 %v118_v18, %v115_v15  ;;  %p286_p11 = pnand %p285_p10, %p279_p7 }
  0x5f   :  { %v122_v26 = vmul.f32 %v118_v18, %v116_v16  ;;  %v109_v28 = vadd.f32 %v105_v19, %v95_v10  ;;  %v110_v29 = vadd.f32 %v106_v20, %v96_v11  ;;  %v111_v30 = vadd.f32 %v107_v21, %v97_v12 }
  0x60   :  { %v112_v31 = vadd.f32 %v108_v22, %v98_v13  ;;  %v132_v35 = vstv %s421_s28 }
  0x61   :  { %v123_v36 = vadd.f32 %v119_v23, %v109_v28  ;;  %v124_v37 = vadd.f32 %v120_v24, %v110_v29  ;;  %v125_v38 = vadd.f32 %v121_v25, %v111_v30  ;;  %v133_v40 = vmul.f32 %v132_v35, %v127_v27 }
  0x62   :  { %v126_v39 = vadd.f32 %v122_v26, %v112_v31  ;;  %v134_v41 = vmul.f32 %v132_v35, %v128_v32  ;;  %v135_v42 = vmul.f32 %v132_v35, %v129_v33  ;;  %v136_v43 = vmul.f32 %v132_v35, %v130_v34 }
  0x63   :  { %v137_v44 = vadd.f32 %v133_v40, %v123_v36 }
  0x64   :  { %v138_v45 = vadd.f32 %v134_v41, %v124_v37  ;;  %v139_v46 = vadd.f32 %v135_v42, %v125_v38  ;;  %v140_v47 = vadd.f32 %v136_v43, %v126_v39 }
  0x65   :  { %vm141_vm0 = vcmp.gt.f32.partialorder %v137_v44, 0.5 }
  0x66   :  { %vm142_vm1 = vcmp.gt.f32.partialorder %v138_v45, 0.5  ;;  %vm143_vm2 = vcmp.gt.f32.partialorder %v139_v46, 0.5  ;;  %vm144_vm3 = vcmp.gt.f32.partialorder %v140_v47, 0.5 }
  0x67   :  { %vm145_vm4 = vmpackc.low %vm142_vm1, %vm141_vm0 }
  0x68   :  { %vm146_vm5 = vmpackc.low %vm144_vm3, %vm143_vm2 }
  0x69   :  { %vm147_vm6 = vmpackc.even %vm146_vm5, %vm145_vm4 }
  0x6a   :  { %v148_v49 = vsel %vm147_vm6, 16843009, %v318_v48 }
  0x6b   :  { %149 = vst [vmem:[#allocation12] sm:$0xff] %v148_v49 }
  0x6c   :  { %289 = shalt.err (!%p286_p11)
}
  0x6d   :  { %s290_s8 = scalar_lea.hbm %s441_s5, 128 }
  0x6e   :  { %p291_p12 = scmp.ne.s32.totalorder %s441_s5, %s290_s8  ;;  %p294_p13 = scmp.lt.u32.totalorder %s290_s8, %s441_s5 }
  0x70   :  { %p296_p0 = pnand %p294_p13, %p291_p12 }
  0x72   :  { %299 = shalt.err (!%p296_p0)
}
  0x73   :  { %159 = dma.vmem_to_hbm [thread:$0]  %s157_s30, 128, %s441_s5, [#allocation4]  }
  0x74   :  { %308 = dma.done.wait [#allocation4], 128  }
  0x75   :  { %309 = vsyncadd [#allocation4], 4294967168 }
  0x76   :  { %163 = vsyncpa [#allocation3], 1 }
  0x77   :  { %164 = vsyncpa [#allocation8], 1 }
  0x78   :  { %165 = vsyncpa [#allocation11], 1 }
  0x79   :  { %166 = vsyncpa [#allocation4], 1 }
  0x7a   :  { %167 = vsyncpa [#allocation5], 1 }

</bundles_post_ra>
